<compile_context>
chip_gen: v7x
topology: tpu7x:2x2x1
jax: 0.10.0
libtpu: 0.0.40
codegen_flags: <defaults>
</compile_context>

<pallas_src>
import functools

import jax
import jax.numpy as jnp
from jax.experimental import pallas as pl
from jax.experimental.pallas import tpu as pltpu


@functools.lru_cache(maxsize=None)
def _roll_sign():
    """Probe pltpu.roll direction once, under the same (default, compiled) backend
    settings as the main kernel: +1 if out[i] = x[i - shift] (np.roll), else -1."""
    def probe(x_ref, o_ref):
        o_ref[...] = pltpu.roll(x_ref[...], 1, 1)

    x = jnp.broadcast_to(jax.lax.iota(jnp.float32, 128), (8, 128))
    y = pl.pallas_call(probe, out_shape=jax.ShapeDtypeStruct((8, 128), jnp.float32))(x)
    return 1 if int(y[0, 0]) == 127 else -1


def _make_kernel(H, W, nb, roll_sign):
    HW = H * W
    L = nb * HW                                    # fused lane axis (nb images)
    taps = [(dh, dw) for dh in (-1, 0, 1) for dw in (-1, 0, 1)]   # tap = kh*3+kw

    def _masks():
        # Per-tap validity masks over the fused lane axis, PERIODIC in HW so every
        # image in the block gets its own zero-padding border; positions whose
        # rolled-in source pixel lies outside the current image (incl. cross-image
        # wrap) are exactly the masked positions.
        p = jax.lax.broadcasted_iota(jnp.int32, (1, L), 1)
        pm = p % HW
        row, col = pm // W, pm % W
        out = []
        for dh, dw in taps:
            conds = []
            if dh == -1:
                conds.append(row >= 1)
            elif dh == 1:
                conds.append(row < H - 1)
            if dw == -1:
                conds.append(col >= 1)
            elif dw == 1:
                conds.append(col < W - 1)
            m = None
            for c in conds:
                m = c if m is None else (m & c)
            out.append(m)
        return out

    def _im2col(img, masks):
        # img: (C, L) f32 -> patches (9*C, L) bf16, tap-major / channel-minor.
        parts = []
        for (dh, dw), m in zip(taps, masks):
            s = dh * W + dw                        # flat-index shift of source pixel
            if s == 0:
                shifted = img
            else:
                shifted = pltpu.roll(img, (-roll_sign * s) % L, 1)  # XLU lane rotate
            if m is not None:
                shifted = jnp.where(m, shifted, 0.0)
            parts.append(shifted)
        # f32 concat (aligned 8-row sublane tiles), then one bulk cast for the MXU.
        return jnp.concatenate(parts, axis=0).astype(jnp.bfloat16)

    def kernel(x_ref, w1_ref, w2_ref, s1_ref, t1_ref, s2_ref, t2_ref, out_ref):
        # x_ref : (Cin, L) f32        w*_ref : (Cout, 9*C) bf16 (unscaled)
        # s*/t* : (Cout, 1) f32       out_ref: (Cout, L) f32
        masks = _masks()
        img = x_ref[...]                           # (Cin, L) f32, reused by shortcut
        s1, t1 = s1_ref[...], t1_ref[...]          # hoisted: loaded once per step
        s2, t2 = s2_ref[...], t2_ref[...]

        p1 = _im2col(img, masks)                   # (9*Cin, L) bf16
        acc1 = jnp.dot(w1_ref[...], p1, preferred_element_type=jnp.float32)
        mid = jnp.maximum(acc1 * s1 + t1, 0.0)     # bn1 + relu, f32 (Cout, L)

        p2 = _im2col(mid, masks)                   # (9*Cout, L) bf16
        acc2 = jnp.dot(w2_ref[...], p2, preferred_element_type=jnp.float32)
        out = jnp.maximum(acc2 * s2 + t2 + img, 0.0)   # bn2 + shortcut + relu
        out_ref[...] = out.astype(out_ref.dtype)

    return kernel


def _pick_images_per_step(N, requested):
    if requested is not None:
        assert N % requested == 0, "images_per_step must divide the batch"
        return requested
    # Default: largest divisor of N up to 32 images per grid step -- amortises the
    # ~0.35us per-grid-step pipeline overhead while staying well under the scoped
    # VMEM default on all generations (~116 KiB/image at C=8, HW=256).  Tune per
    # chip via images_per_step (e.g. keep N // nb >= 2 on v7x so both TCs get work).
    best = 1
    for d in range(1, min(N, 32) + 1):
        if N % d == 0:
            best = d
    return best


def basic_block(x_nchw, w1, w2, bn1, bn2, *, images_per_step=None):
    """x_nchw: (N, Cin, H, W) f32; w*: PyTorch OIHW (Cout, Cin, 3, 3);
    bn* = (gamma, beta, running_mean, running_var) eval-mode stats."""
    N, Cin, H, W = x_nchw.shape
    Cout = w1.shape[0]
    assert Cin == Cout, "identity-shortcut configuration (stride=1, in_planes==planes)"
    # TODO(synk): strided option-'A' (slice+zero-pad) / option-'B' (1x1 conv proj)
    # shortcut paths are not implemented; only the module's default path is covered.
    HW = H * W
    assert HW % 128 == 0, "H*W must be a multiple of 128 for lane-dense tiles"
    nb = _pick_images_per_step(N, images_per_step)
    L = nb * HW

    def fold_bn(gamma, beta, mean, var, eps=1e-5):
        scale = gamma / jnp.sqrt(var + eps)
        return scale, beta - mean * scale

    s1, t1 = fold_bn(*bn1)
    s2, t2 = fold_bn(*bn2)

    # PyTorch OIHW -> (O, KH, KW, I) -> (Cout, 9*Cin), bf16.  BN scale is NOT folded
    # into the bf16 weights; it is applied in f32 on the accumulator for accuracy.
    w1_k = jnp.transpose(w1, (0, 2, 3, 1)).reshape(Cout, 9 * Cin).astype(jnp.bfloat16)
    w2_k = jnp.transpose(w2, (0, 2, 3, 1)).reshape(Cout, 9 * Cout).astype(jnp.bfloat16)
    s1_k = s1.reshape(Cout, 1).astype(jnp.float32)
    t1_k = t1.reshape(Cout, 1).astype(jnp.float32)
    s2_k = s2.reshape(Cout, 1).astype(jnp.float32)
    t2_k = t2.reshape(Cout, 1).astype(jnp.float32)

    # Layout plumbing (wrapper-side, one HBM pass): channels -> sublanes,
    # batch + spatial fused on the lane axis.
    x_k = jnp.transpose(x_nchw, (1, 0, 2, 3)).reshape(Cin, N * HW)

    kernel = _make_kernel(H, W, nb, _roll_sign())

    out = pl.pallas_call(
        kernel,
        out_shape=jax.ShapeDtypeStruct((Cout, N * HW), jnp.float32),
        grid_spec=pltpu.PrefetchScalarGridSpec(
            num_scalar_prefetch=0,
            grid=(N // nb,),                        # parallel over image chunks
            in_specs=[
                pl.BlockSpec((Cin, L), lambda n: (0, n)),
                pl.BlockSpec((Cout, 9 * Cin), lambda n: (0, 0)),
                pl.BlockSpec((Cout, 9 * Cout), lambda n: (0, 0)),
                pl.BlockSpec((Cout, 1), lambda n: (0, 0)),
                pl.BlockSpec((Cout, 1), lambda n: (0, 0)),
                pl.BlockSpec((Cout, 1), lambda n: (0, 0)),
                pl.BlockSpec((Cout, 1), lambda n: (0, 0)),
            ],
            out_specs=pl.BlockSpec((Cout, L), lambda n: (0, n)),
        ),
        compiler_params=pltpu.CompilerParams(dimension_semantics=("parallel",)),
    )(x_k, w1_k, w2_k, s1_k, t1_k, s2_k, t2_k)

    return jnp.transpose(out.reshape(Cout, N, H, W), (1, 0, 2, 3))


def reference_forward(x, w1, w2, bn1, bn2):
    """Pure-JAX f32 reference (NCHW, matches PyTorch eval-mode BasicBlock)."""
    def conv(a, w):
        return jax.lax.conv_general_dilated(
            a, w, window_strides=(1, 1), padding=((1, 1), (1, 1)),
            dimension_numbers=('NCHW', 'OIHW', 'NCHW'))

    def bn(a, gamma, beta, mean, var, eps=1e-5):
        c = lambda v: v[None, :, None, None]
        return (a - c(mean)) / jnp.sqrt(c(var) + eps) * c(gamma) + c(beta)

    out = jnp.maximum(bn(conv(x, w1), *bn1), 0.0)
    out = bn(conv(out, w2), *bn2) + x
    return jnp.maximum(out, 0.0)


if __name__ == "__main__":
    N, C, H, W = 2, 8, 16, 16        # in_planes == planes == 8, stride == 1
    key = jax.random.PRNGKey(0)
    ks = jax.random.split(key, 12)

    x = jax.random.normal(ks[0], (N, C, H, W), jnp.float32)
    w1 = jax.random.normal(ks[1], (C, C, 3, 3), jnp.float32) * 0.1
    w2 = jax.random.normal(ks[2], (C, C, 3, 3), jnp.float32) * 0.1

    bn1 = (jax.random.uniform(ks[3], (C,), jnp.float32, 0.5, 1.5),   # gamma
           jax.random.normal(ks[4], (C,), jnp.float32) * 0.1,        # beta
           jax.random.normal(ks[5], (C,), jnp.float32) * 0.1,        # running_mean
           jax.random.uniform(ks[6], (C,), jnp.float32, 0.5, 1.5))   # running_var
    bn2 = (jax.random.uniform(ks[7], (C,), jnp.float32, 0.5, 1.5),
           jax.random.normal(ks[8], (C,), jnp.float32) * 0.1,
           jax.random.normal(ks[9], (C,), jnp.float32) * 0.1,
           jax.random.uniform(ks[10], (C,), jnp.float32, 0.5, 1.5))

    out = jax.block_until_ready(basic_block(x, w1, w2, bn1, bn2))
    ref = jax.block_until_ready(reference_forward(x, w1, w2, bn1, bn2))

    assert out.shape == (N, C, H, W)
    # bf16 MXU operands (f32 accumulation / f32 BN) -> relaxed tolerance vs f32 ref.
    assert jnp.allclose(out, ref, atol=5e-2, rtol=5e-2), "mismatch vs JAX reference"

    print("KERNEL_OK")
</pallas_src>

<mosaic_0001>
module attributes {stable_mosaic.version = 11 : i64} {
  func.func @probe(%arg0: memref<8x128xf32, #tpu.memory_space<vmem>>, %arg1: memref<8x128xf32, #tpu.memory_space<vmem>>) attributes {dimension_semantics = [], scalar_prefetch = 0 : i64, scratch_operands = 0 : i64, tpu.core_type = #tpu.core_type<tc>} {
    %c0 = arith.constant 0 : index
    %c0_0 = arith.constant 0 : index
    %0 = vector.load %arg0[%c0, %c0_0] : memref<8x128xf32, #tpu.memory_space<vmem>>, vector<8x128xf32>
    %c1_i32 = arith.constant 1 : i32
    %1 = tpu.dynamic_rotate %0 by %c1_i32 dim 1 : vector<8x128xf32>, i32 -> vector<8x128xf32>
    %c0_1 = arith.constant 0 : index
    %c0_2 = arith.constant 0 : index
    %2 = vector.load %arg1[%c0_1, %c0_2] : memref<8x128xf32, #tpu.memory_space<vmem>>, vector<8x128xf32>
    tpu.vector_store %arg1[%c0_1, %c0_2], %1 {strides = array<i32>} : memref<8x128xf32, #tpu.memory_space<vmem>>, vector<8x128xf32>,
    return
  }
}

</mosaic_0001>

<bundles_post_ra>
// kernel: tpu_custom_call.1
= control target key start
LH: loop header
LB: loop body
LE: loop exit
PB: predicated region body
PF: predicated region fallthrough
CT: control target
= control target key end

     0   :  { %6 = vsyncpa [#allocation3], 0  ;;  %s128_s0 = inlined_call_operand.hbm [shape: f32[8,128], index: 0, kind: input, shape index: {}]   ;;  %s129_s1 = inlined_call_operand.hbm [shape: f32[8,128], index: 1, kind: output, shape index: {}]  }
   0x1   :  { %7 = vsyncpa [#allocation4], 0  ;;  %s91_s6 = smov [#allocation2]   ;;  %s43_s10 = scalar_lea.hbm %s128_s0, 128 }
   0x2   :  { %s14_s7 = sshll.u32 %s91_s6, 4  ;;  %p44_p0 = scmp.ne.s32.totalorder %s128_s0, %s43_s10  ;;  %s15_s7 = int_to_ptr.vmem [resolvable:$true] %s14_s7 }
   0x3   :  { %p47_p1 = scmp.lt.u32.totalorder %s43_s10, %s128_s0 }
   0x5   :  { %p49_p2 = pnand %p47_p1, %p44_p0 }
   0x7   :  { %52 = shalt.err (!%p49_p2)
}
   0x8   :  { %s53_s15 = scalar_lea.vmem %s15_s7, 128  ;;  %p58_p4 = scmp.lt.s32.totalorder %s15_s7, %s15_s7 }
   0x9   :  { %p54_p3 = scmp.ne.s32.totalorder %s15_s7, %s53_s15  ;;  %p59_p5 = scmp.lt.s32.totalorder %s53_s15, %s53_s15 }
   0xb   :  { %p60_p6 = por %p59_p5, %p58_p4 }
   0xd   :  { %p61_p7 = pnand %p60_p6, %p54_p3 }
   0xf   :  { %64 = shalt.err (!%p61_p7)
}
  0x10   :  { %17 = dma.hbm_to_vmem [thread:$0]  %s128_s0, 128, %s15_s7, [#allocation3]  }
  0x11   :  { %87 = dma.done.wait [#allocation3], 128  }
  0x12   :  { %88 = vsyncadd [#allocation3], 4294967168  ;;  %v21_v0 = vld [vmem:[#allocation2] sm:$0xff]  ;;  %s92_s18 = smov 1   ;;  %s93_s19 = smov [#allocation5]  }
  0x13   :  { %22 = vrot.lane.b32.xlu0 %v21_v0, %s92_s18  ;;  %s31_s20 = sshll.u32 %s93_s19, 4  ;;  %s32_s20 = int_to_ptr.vmem [resolvable:$true] %s31_s20 }
  0x14   :  { %s65_s21 = scalar_lea.vmem %s32_s20, 128  ;;  %p70_p9 = scmp.lt.s32.totalorder %s32_s20, %s32_s20 }
  0x15   :  { %p66_p8 = scmp.ne.s32.totalorder %s32_s20, %s65_s21  ;;  %p71_p10 = scmp.lt.s32.totalorder %s65_s21, %s65_s21 }
  0x17   :  { %p72_p11 = por %p71_p10, %p70_p9 }
  0x19   :  { %p73_p12 = pnand %p72_p11, %p66_p8 }
  0x85   :  { %v23_v1 = vpop.permute.xlu0 %22 }
  0x86   :  { %24 = vst [vmem:[#allocation5] sm:$0xff] %v23_v1 }
  0x87   :  { %76 = shalt.err (!%p73_p12)
}
  0x88   :  { %s77_s0 = scalar_lea.hbm %s129_s1, 128 }
  0x89   :  { %p78_p13 = scmp.ne.s32.totalorder %s129_s1, %s77_s0  ;;  %p81_p0 = scmp.lt.u32.totalorder %s77_s0, %s129_s1 }
  0x8b   :  { %p83_p1 = pnand %p81_p0, %p78_p13 }
  0x8d   :  { %86 = shalt.err (!%p83_p1)
}
  0x8e   :  { %34 = dma.vmem_to_hbm [thread:$0]  %s32_s20, 128, %s129_s1, [#allocation4]  }
  0x8f   :  { %89 = dma.done.wait [#allocation4], 128  }
  0x90   :  { %90 = vsyncadd [#allocation4], 4294967168 }
  0x91   :  { %38 = vsyncpa [#allocation3], 1 }
  0x92   :  { %39 = vsyncpa [#allocation4], 1 }

</bundles_post_ra>
